<compile_context>
chip_gen: v6e
topology: v6e:2x2x1
jax: 0.10.0
libtpu: 0.0.40
codegen_flags: <defaults>
</compile_context>

<pallas_src>
import functools

import jax
import jax.numpy as jnp
from jax.experimental import pallas as pl
from jax.experimental.pallas import tpu as pltpu


def _smooth_l1(d):
    """Branch-free SmoothL1 / Huber (beta=1): m*(|d| - 0.5*m), m = min(|d|,1)."""
    ad = jnp.abs(d)
    m = jnp.minimum(ad, 1.0)
    return m * (ad - 0.5 * m)


def _fold_width(tk, target=512):
    """Width the per-step lane fold stops at (multiple of 128, usually <=512)."""
    w = tk
    while w > target and w % 256 == 0:
        w //= 2
    return w


def _coarse_kernel(x_ref, y_ref, opix_ref, ogram_ref, pix_acc, m_acc, *,
                   fold_to):
    # x_ref / y_ref : (1, C_pad, TK) lane-dense slab of the flattened (B,C,HW)
    # opix_ref      : (1, 1, 1, 1)          per-(split,batch) pixel partial sum
    # ogram_ref     : (1, 1, C_pad, C_pad)  per-(split,batch) partial (x-y)(x+y)^T
    k = pl.program_id(2)

    @pl.when(k == 0)
    def _init():
        pix_acc[...] = jnp.zeros_like(pix_acc)
        m_acc[...] = jnp.zeros_like(m_acc)

    x = x_ref[0]                   # (C_pad, TK), kept in the input dtype
    y = y_ref[0]
    d = x - y                      # shared between pixel and Gram paths
    s = x + y

    # ---- Pixel smooth-L1: fold the lane axis in-register (pure VPU adds on
    # 128-aligned slices) before touching the small VMEM accumulator; the
    # final cross-lane reduce is deferred to the epilogue.
    v = _smooth_l1(d.astype(jnp.float32))
    while v.shape[-1] > fold_to:
        h = v.shape[-1] // 2
        v = v[:, :h] + v[:, h:]
    pix_acc[...] += v

    # ---- Fused Gram partial on the MXU: a single matmul replaces both
    # G_x and G_out contractions (G_x - G_out = 0.5*(M + M^T)).  Operands stay
    # in the input dtype (native bf16 path when inputs are bf16); f32 accum.
    m_acc[...] += jnp.einsum('ct,dt->cd', d, s,
                             preferred_element_type=jnp.float32)

    @pl.when(k == pl.num_programs(2) - 1)
    def _finalize():
        opix_ref[...] = jnp.full(opix_ref.shape, jnp.sum(pix_acc[...]),
                                 jnp.float32)
        ogram_ref[...] = m_acc[...].reshape(ogram_ref.shape)


def _tpu_budgets():
    """(block_bytes, vmem_limit_bytes) tuned per TPU generation."""
    vmem_cap = None
    try:
        info = pltpu.get_tpu_info()
        for attr in ("vmem_capacity_bytes", "vmem_size_bytes", "vmem_bytes"):
            vmem_cap = getattr(info, attr, None)
            if vmem_cap:
                break
    except Exception:
        vmem_cap = None
    if not vmem_cap:
        vmem_cap = 64 << 20                   # conservative (v7x-sized) default
    if vmem_cap >= (100 << 20):               # v5e / v6e: 128 MiB physical VMEM
        return 6 << 20, 64 << 20
    return 2 << 20, 32 << 20                  # v7x: 64 MiB per TensorCore


def _pick_tk(hw, cap):
    """Largest lane-dense TK (multiple of 128); avoid HW padding when possible."""
    if hw % 128 == 0:
        best, d, lim = 128, 128, min(hw, cap)
        while d <= lim:
            if hw % d == 0:
                best = d
            d += 128
        return best, hw                       # no padding needed
    hw128 = ((hw + 127) // 128) * 128
    tk = min(hw128, cap)
    hw_pad = ((hw + tk - 1) // tk) * tk
    return tk, hw_pad


def coarse_loss(x, out, *, block_bytes=None):
    """CoarseLoss forward. Returns (total, p_loss, s_loss) as f32 scalars."""
    assert x.shape == out.shape, (x.shape, out.shape)
    B, C, H, W = x.shape
    HW = H * W
    itemsize = jnp.dtype(x.dtype).itemsize

    auto_block, vmem_limit = _tpu_budgets()
    if block_bytes is None:
        block_bytes = auto_block

    # Only pad C when it is not sublane-aligned (zero rows contribute 0 to both
    # losses); HW is only padded when it has a ragged remainder after 128.
    C_pad = C if C % 8 == 0 else ((C + 7) // 8) * 8
    cap = max(128, (block_bytes // (itemsize * C_pad)) // 128 * 128)
    TK, HW_pad = _pick_tk(HW, cap)
    num_k = HW_pad // TK
    AW = _fold_width(TK)

    # Split the HW-tile axis into two parallel groups when the batch alone
    # cannot occupy both v7x TensorCores (no-op on single-TC v5e/v6e).
    S = 2 if (B == 1 and num_k >= 2 and num_k % 2 == 0) else 1
    kps = num_k // S

    pad_c, pad_hw = C_pad - C, HW_pad - HW

    def prep(a):
        a = a.reshape(B, C, HW)
        if pad_c or pad_hw:                   # materialized copy only if needed
            a = jnp.pad(a, ((0, 0), (0, pad_c), (0, pad_hw)))
        return a

    xf = prep(x)
    yf = prep(out)

    kern = functools.partial(_coarse_kernel, fold_to=AW)

    cost = pl.CostEstimate(
        flops=int(6 * B * C_pad * HW_pad + 2 * B * C_pad * C_pad * HW_pad),
        transcendentals=0,
        bytes_accessed=int(2 * B * C_pad * HW_pad * itemsize
                           + S * B * (C_pad * C_pad + 1) * 4),
    )

    in_map = lambda s, b, k: (b, 0, s * kps + k)
    out_map = lambda s, b, k: (s, b, 0, 0)

    pix_parts, gram_parts = pl.pallas_call(
        kern,
        out_shape=(jax.ShapeDtypeStruct((S, B, 1, 1), jnp.float32),
                   jax.ShapeDtypeStruct((S, B, C_pad, C_pad), jnp.float32)),
        grid_spec=pltpu.PrefetchScalarGridSpec(
            num_scalar_prefetch=0,
            grid=(S, B, kps),
            in_specs=[pl.BlockSpec((1, C_pad, TK), in_map),
                      pl.BlockSpec((1, C_pad, TK), in_map)],
            out_specs=(pl.BlockSpec((1, 1, 1, 1), out_map),
                       pl.BlockSpec((1, 1, C_pad, C_pad), out_map)),
            scratch_shapes=[pltpu.VMEM((C_pad, AW), jnp.float32),
                            pltpu.VMEM((C_pad, C_pad), jnp.float32)],
        ),
        compiler_params=pltpu.CompilerParams(
            dimension_semantics=("parallel", "parallel", "arbitrary"),
            vmem_limit_bytes=vmem_limit,
        ),
        cost_estimate=cost,
    )(xf, yf)

    # Tiny O(B*C^2) epilogue: combine split partials, symmetrize to recover
    # G_x - G_out, smooth-L1 and normalize.  Padded rows/cols are exactly zero
    # so they contribute 0; divisors use the real (unpadded) counts.
    M = jnp.sum(gram_parts, axis=0)                                  # (B,Cp,Cp)
    gd = 0.5 * (M + jnp.swapaxes(M, -1, -2)) * (1.0 / (H * W * C))
    s_loss = jnp.sum(_smooth_l1(gd)) / (B * C * C)
    p_loss = jnp.sum(pix_parts) / (B * C * H * W)
    total = 20.0 * p_loss + 100.0 * s_loss
    return total, p_loss, s_loss


if __name__ == "__main__":
    key = jax.random.PRNGKey(0)
    kx, ko = jax.random.split(key)
    x = jax.random.normal(kx, (2, 4, 16, 16), dtype=jnp.float32)
    out = jax.random.normal(ko, (2, 4, 16, 16), dtype=jnp.float32)

    total, p_loss, s_loss = jax.block_until_ready(coarse_loss(x, out))

    # Plain-JAX reference (mirrors the PyTorch module; .detach() is a no-op
    # for the forward value).
    def smooth_l1_mean(a, b):
        d = a - b
        ad = jnp.abs(d)
        return jnp.mean(jnp.where(ad < 1.0, 0.5 * d * d, ad - 0.5))

    def gram(m):
        b, c, h, w = m.shape
        mm = m.reshape(b, c, h * w)
        return jnp.einsum('bct,bdt->bcd', mm, mm) / (h * w * c)

    p_ref = smooth_l1_mean(x, out)
    s_ref = smooth_l1_mean(gram(x), gram(out))
    t_ref = 20.0 * p_ref + 100.0 * s_ref

    assert jnp.allclose(p_loss, p_ref, rtol=1e-3, atol=1e-5), (p_loss, p_ref)
    assert jnp.allclose(s_loss, s_ref, rtol=1e-3, atol=1e-5), (s_loss, s_ref)
    assert jnp.allclose(total, t_ref, rtol=1e-3, atol=1e-4), (total, t_ref)

    print("KERNEL_OK")
</pallas_src>

<mosaic_0001>
module attributes {stable_mosaic.version = 11 : i64} {
  func.func @_coarse_kernel(%arg0: i32, %arg1: i32, %arg2: i32, %arg3: memref<1x8x256xf32, #tpu.memory_space<vmem>>, %arg4: memref<1x8x256xf32, #tpu.memory_space<vmem>>, %arg5: memref<1x1x1x1xf32, #tpu.memory_space<vmem>>, %arg6: memref<1x1x8x8xf32, #tpu.memory_space<vmem>>, %arg7: memref<8x256xf32, #tpu.memory_space<vmem>>, %arg8: memref<8x8xf32, #tpu.memory_space<vmem>>) attributes {dimension_semantics = [#tpu.dimension_semantics<parallel>, #tpu.dimension_semantics<parallel>, #tpu.dimension_semantics<arbitrary>], iteration_bounds = array<i64: 1, 2, 1>, scalar_prefetch = 0 : i64, scratch_operands = 2 : i64, tpu.core_type = #tpu.core_type<tc>, window_params = [{transform_indices = @transform_0, window_bounds = array<i64: 1, 8, 256>}, {transform_indices = @transform_1, window_bounds = array<i64: 1, 8, 256>}, {transform_indices = @transform_2, window_bounds = array<i64: 1, 1, 1, 1>}, {transform_indices = @transform_3, window_bounds = array<i64: 1, 1, 8, 8>}]} {
    %c0_i32 = arith.constant 0 : i32
    %0 = arith.cmpi eq, %arg2, %c0_i32 : i32
    %1 = arith.extui %0 : i1 to i32
    %c0_i32_0 = arith.constant 0 : i32
    %2 = arith.cmpi ne, %1, %c0_i32_0 : i32
    scf.if %2 {
      %cst_18 = arith.constant 0.000000e+00 : f32
      %26 = vector.broadcast %cst_18 : f32 to vector<8x256xf32>
      %c0_19 = arith.constant 0 : index
      %c0_20 = arith.constant 0 : index
      %27 = vector.load %arg7[%c0_19, %c0_20] : memref<8x256xf32, #tpu.memory_space<vmem>>, vector<8x256xf32>
      tpu.vector_store %arg7[%c0_19, %c0_20], %26 {strides = array<i32>} : memref<8x256xf32, #tpu.memory_space<vmem>>, vector<8x256xf32>,
      %cst_21 = arith.constant 0.000000e+00 : f32
      %28 = vector.broadcast %cst_21 : f32 to vector<8x8xf32>
      %c0_22 = arith.constant 0 : index
      %c0_23 = arith.constant 0 : index
      %29 = vector.load %arg8[%c0_22, %c0_23] : memref<8x8xf32, #tpu.memory_space<vmem>>, vector<8x8xf32>
      tpu.vector_store %arg8[%c0_22, %c0_23], %28 {strides = array<i32>} : memref<8x8xf32, #tpu.memory_space<vmem>>, vector<8x8xf32>,
    } else {
    }
    %c0 = arith.constant 0 : index
    %c0_1 = arith.constant 0 : index
    %c0_2 = arith.constant 0 : index
    %3 = vector.load %arg3[%c0, %c0_1, %c0_2] : memref<1x8x256xf32, #tpu.memory_space<vmem>>, vector<1x8x256xf32>
    %4 = vector.shape_cast %3 : vector<1x8x256xf32> to vector<8x256xf32>
    %c0_3 = arith.constant 0 : index
    %c0_4 = arith.constant 0 : index
    %c0_5 = arith.constant 0 : index
    %5 = vector.load %arg4[%c0_3, %c0_4, %c0_5] : memref<1x8x256xf32, #tpu.memory_space<vmem>>, vector<1x8x256xf32>
    %6 = vector.shape_cast %5 : vector<1x8x256xf32> to vector<8x256xf32>
    %7 = arith.subf %4, %6 : vector<8x256xf32>
    %8 = arith.addf %4, %6 : vector<8x256xf32>
    %9 = math.absf %7 : vector<8x256xf32>
    %cst = arith.constant 1.000000e+00 : f32
    %10 = vector.broadcast %cst : f32 to vector<8x256xf32>
    %11 = arith.minimumf %9, %10 : vector<8x256xf32>
    %cst_6 = arith.constant 5.000000e-01 : f32
    %12 = vector.broadcast %cst_6 : f32 to vector<8x256xf32>
    %13 = arith.mulf %12, %11 : vector<8x256xf32>
    %14 = arith.subf %9, %13 : vector<8x256xf32>
    %15 = arith.mulf %11, %14 : vector<8x256xf32>
    %c0_7 = arith.constant 0 : index
    %c0_8 = arith.constant 0 : index
    %16 = vector.load %arg7[%c0_7, %c0_8] : memref<8x256xf32, #tpu.memory_space<vmem>>, vector<8x256xf32>
    %17 = arith.addf %16, %15 : vector<8x256xf32>
    %c0_9 = arith.constant 0 : index
    %c0_10 = arith.constant 0 : index
    %18 = vector.load %arg7[%c0_9, %c0_10] : memref<8x256xf32, #tpu.memory_space<vmem>>, vector<8x256xf32>
    tpu.vector_store %arg7[%c0_9, %c0_10], %17 {strides = array<i32>} : memref<8x256xf32, #tpu.memory_space<vmem>>, vector<8x256xf32>,
    %c0_11 = arith.constant 0 : index
    %c0_12 = arith.constant 0 : index
    %19 = vector.load %arg8[%c0_11, %c0_12] : memref<8x8xf32, #tpu.memory_space<vmem>>, vector<8x8xf32>
    "tpu.trace_start"() <{level = 10 : i32, message = "ct,dt->cd"}> : () -> ()
    %cst_13 = arith.constant dense<0.000000e+00> : vector<8x8xf32>
    %20 = tpu.matmul %7, %8, %cst_13 {dimension_numbers = #tpu.dot_dimension_numbers<[1], [1], [0], [0], [0, 0, 1, 0], [], []>} : vector<8x256xf32>, vector<8x256xf32>, vector<8x8xf32> -> vector<8x8xf32>
    "tpu.trace_stop"() : () -> ()
    %21 = arith.addf %19, %20 : vector<8x8xf32>
    %c0_14 = arith.constant 0 : index
    %c0_15 = arith.constant 0 : index
    %22 = vector.load %arg8[%c0_14, %c0_15] : memref<8x8xf32, #tpu.memory_space<vmem>>, vector<8x8xf32>
    tpu.vector_store %arg8[%c0_14, %c0_15], %21 {strides = array<i32>} : memref<8x8xf32, #tpu.memory_space<vmem>>, vector<8x8xf32>,
    %c0_i32_16 = arith.constant 0 : i32
    %23 = arith.cmpi eq, %arg2, %c0_i32_16 : i32
    %24 = arith.extui %23 : i1 to i32
    %c0_i32_17 = arith.constant 0 : i32
    %25 = arith.cmpi ne, %24, %c0_i32_17 : i32
    scf.if %25 {
      %c0_18 = arith.constant 0 : index
      %c0_19 = arith.constant 0 : index
      %26 = vector.load %arg7[%c0_18, %c0_19] : memref<8x256xf32, #tpu.memory_space<vmem>>, vector<8x256xf32>
      %27 = vector.shape_cast %26 : vector<8x256xf32> to vector<1x8x256xf32>
      %cst_20 = arith.constant dense<0.000000e+00> : vector<1xf32>
      %28 = vector.multi_reduction <add>, %27, %cst_20 [1, 2] : vector<1x8x256xf32> to vector<1xf32>
      %29 = vector.shape_cast %28 : vector<1xf32> to vector<1x1x1xf32>
      %30 = vector.extract %29[0, 0, 0] : f32 from vector<1x1x1xf32>
      %31 = vector.broadcast %30 : f32 to vector<1x1x1x1xf32>
      %c0_21 = arith.constant 0 : index
      %c0_22 = arith.constant 0 : index
      %c0_23 = arith.constant 0 : index
      %c0_24 = arith.constant 0 : index
      %32 = vector.load %arg5[%c0_21, %c0_22, %c0_23, %c0_24] : memref<1x1x1x1xf32, #tpu.memory_space<vmem>>, vector<1x1x1x1xf32>
      tpu.vector_store %arg5[%c0_21, %c0_22, %c0_23, %c0_24], %31 {strides = array<i32>} : memref<1x1x1x1xf32, #tpu.memory_space<vmem>>, vector<1x1x1x1xf32>,
      %c0_25 = arith.constant 0 : index
      %c0_26 = arith.constant 0 : index
      %33 = vector.load %arg8[%c0_25, %c0_26] : memref<8x8xf32, #tpu.memory_space<vmem>>, vector<8x8xf32>
      %34 = vector.shape_cast %33 : vector<8x8xf32> to vector<1x1x8x8xf32>
      %c0_27 = arith.constant 0 : index
      %c0_28 = arith.constant 0 : index
      %c0_29 = arith.constant 0 : index
      %c0_30 = arith.constant 0 : index
      %35 = vector.load %arg6[%c0_27, %c0_28, %c0_29, %c0_30] : memref<1x1x8x8xf32, #tpu.memory_space<vmem>>, vector<1x1x8x8xf32>
      tpu.vector_store %arg6[%c0_27, %c0_28, %c0_29, %c0_30], %34 {strides = array<i32>} : memref<1x1x8x8xf32, #tpu.memory_space<vmem>>, vector<1x1x8x8xf32>,
    } else {
    }
    return
  }
  func.func @transform_0(%arg0: i32, %arg1: i32, %arg2: i32) -> (i32, i32, i32) {
    %c1_i32 = arith.constant 1 : i32
    %0 = arith.muli %arg0, %c1_i32 : i32
    %1 = arith.addi %0, %arg2 : i32
    %c0_i32 = arith.constant 0 : i32
    %c0_i32_0 = arith.constant 0 : i32
    return %arg1, %c0_i32, %1 : i32, i32, i32
  }
  func.func @transform_1(%arg0: i32, %arg1: i32, %arg2: i32) -> (i32, i32, i32) {
    %c1_i32 = arith.constant 1 : i32
    %0 = arith.muli %arg0, %c1_i32 : i32
    %1 = arith.addi %0, %arg2 : i32
    %c0_i32 = arith.constant 0 : i32
    %c0_i32_0 = arith.constant 0 : i32
    return %arg1, %c0_i32, %1 : i32, i32, i32
  }
  func.func @transform_2(%arg0: i32, %arg1: i32, %arg2: i32) -> (i32, i32, i32, i32) {
    %c0_i32 = arith.constant 0 : i32
    %c0_i32_0 = arith.constant 0 : i32
    %c0_i32_1 = arith.constant 0 : i32
    return %arg0, %arg1, %c0_i32, %c0_i32_0 : i32, i32, i32, i32
  }
  func.func @transform_3(%arg0: i32, %arg1: i32, %arg2: i32) -> (i32, i32, i32, i32) {
    %c0_i32 = arith.constant 0 : i32
    %c0_i32_0 = arith.constant 0 : i32
    %c0_i32_1 = arith.constant 0 : i32
    return %arg0, %arg1, %c0_i32, %c0_i32_0 : i32, i32, i32, i32
  }
}

</mosaic_0001>

<bundles_post_ra>
// kernel: tpu_custom_call.1
= control target key start
LH: loop header
LB: loop body
LE: loop exit
PB: predicated region body
PF: predicated region fallthrough
CT: control target
= control target key end

     0   :  { %9 = vsyncpa [#allocation5], 0  ;;  %s1021_s0 = inlined_call_operand.hbm [shape: f32[2,8,256], index: 0, kind: input, shape index: {}]   ;;  %s1022_s1 = inlined_call_operand.hbm [shape: f32[2,8,256], index: 1, kind: input, shape index: {}]   ;;  %s1023_s2 = inlined_call_operand.vmem [shape: f32[1,2,1,1], index: 2, kind: output, shape index: {0}]   ;;  %s1024_s3 = inlined_call_operand.hbm [shape: f32[1,2,8,8], index: 3, kind: output, shape index: {1}]  }
   0x1   :  { %11 = vsyncpa [#allocation5 + $0x1], 0 }
   0x2   :  { %12 = vsyncpa [#allocation8], 0 }
   0x3   :  { %14 = vsyncpa [#allocation8 + $0x1], 0 }
   0x4   :  { %15 = vsyncpa [#allocation6], 0 }
   0x5   :  { %17 = vsyncpa [#allocation6 + $0x1], 0  ;;  %s836_s12 = smov 0   ;;  %s838_s13 = smov 0  }
   0x6   :  { %s840_s14 = smov 0   ;;  %s842_s15 = smov 0  }
   0x7   :  { %s844_s16 = smov 0   ;;  %s846_s17 = smov 0  }
   0x8 LB: > { %s580_s18 = sadd.s32 4294967295, %s810_s17   ;;  %s581_s19 = sadd.s32 4294967294, %s810_s17   ;;  %s810_s17 = sphi %s846_s17, %s23_s17   ;;  %s806_s16 = sphi %s844_s16, %s1036_s16   ;;  %s802_s15 = sphi %s842_s15, %s1035_s15   ;;  %s798_s14 = sphi %s840_s14, %s1034_s14   ;;  %s794_s13 = sphi %s838_s13, %s1033_s13   ;;  %s790_s12 = sphi %s836_s12, %s1032_s12  }
   0x9   : > { %s38_s20 = sadd.s32 1, %s806_s16  ;;  %s53_s21 = sadd.s32 1, %s798_s14 }
   0xa   : > { %p40_p0 = scmp.ge.s32.totalorder %s38_s20, 2  ;;  %p60_p1 = scmp.ne.s32.totalorder %s798_s14, %s794_s13 }
   0xb   : > { %p61_p2 = scmp.eq.s32.totalorder %s810_s17, 0  ;;  %p66_p3 = scmp.ne.s32.totalorder %s794_s13, %s790_s12 }
   0xc   : > { %s1038_s20 = smov (%p40_p0, %s38_s20), 0  ;;  %p67_p5 = scmp.eq.s32.totalorder %s580_s18, 0 }
   0xd   : > { %p877_p4 = por %p61_p2, %p60_p1  ;;  %s48_s23 = ssub.s32 %s806_s16, %s1038_s20 }
   0xe   : > { %p150_p6 = scmp.eq.s32.totalorder %s580_s18, 1  ;;  %p51_p7 = scmp.eq.s32.totalorder %s48_s23, 0 }
   0xf   : > { %p883_p8 = por %p67_p5, %p66_p3  ;;  %p156_p10 = scmp.eq.s32.totalorder %s581_s19, 1 }
  0x10   : > { %p887_p9 = por %p150_p6, %p60_p1  ;;  %p619_p13 = scmp.lt.s32.totalorder %s810_s17, 2 }
  0x11   : > { %s892_s26 = scalar_select %p51_p7, %s798_s14, %s53_s21  }
  0x12   : > { %p894_p11 = por %p156_p10, %p66_p3  ;;  %s901_s28 = sand.u32 1, %s798_s14  }
  0x13   : > { %s584_s29 = sshll.u32 %s901_s28, 4  ;;  %s598_s30 = sshll.u32 %s806_s16, 8 }
  0x14   : > { %s189_s6 = scalar_lea.hbm %s1021_s0, %s598_s30  ;;  %s180_s7 = scalar_lea.vmem [#allocation4], %s584_s29 }
  0x15   : > { %s191_s8 = sshll.u32 %s180_s7, 4  ;;  %p910_p0 = pnand %p619_p13, %p877_p4  ;;  %s192_s8 = int_to_ptr.vmem [resolvable:$true] %s191_s8 }
  0x16   : > { %p590_p1 = scmp.ge.s32.totalorder %s810_s17, 1  ;;  %p218_p2 = scmp.lt.s32.totalorder %s810_s17, 3 }
  0x17   : > { %s177_s10 = scalar_lea.sflag [#allocation5], %s901_s28  ;;  %p672_p3 = pneg %p910_p0 }
  0x18   : > { %s683_s11 = scalar_lea.vmem %s192_s8, 256  ;;  %s812_s18 = smov [#allocation4]  }
  0x19   : > { %p684_p5 = scmp.ne.s32.totalorder %s192_s8, %s683_s11  ;;  %s688_s19 = sshll.u32 %s812_s18, 4  ;;  %s689_s19 = int_to_ptr.vmem [resolvable:$false] %s688_s19 }
  0x1a   : > { %s690_s21 = scalar_lea.vmem %s689_s19, 512  ;;  %p691_p4 = scmp.lt.s32.totalorder %s192_s8, %s689_s19 }
  0x1b   : > { %p686_p6 = pnand %p684_p5, %p672_p3  ;;  %p692_p10 = scmp.lt.s32.totalorder %s690_s21, %s683_s11 }
  0x1d   : > { %p687_p7 = pneg %p686_p6  ;;  %p693_p13 = por %p692_p10, %p691_p4 }
  0x1f   : > { %p694_p12 = pnand %p693_p13, %p687_p7 }
  0x21   : > { %697 = shalt.err (!%p694_p12)
}
  0x22   : > { %611 = dma.hbm_to_vmem [thread:$0]  (!%p910_p0), %s189_s6, 256, %s192_s8, %s177_s10  }
  0x23   : > { %p928_p5 = pnand %p590_p1, %p218_p2  ;;  %s211_s5 = scalar_lea.hbm %s1022_s1, %s598_s30 }
  0x24   : > { %s202_s7 = scalar_lea.vmem [#allocation7], %s584_s29  ;;  %s199_s18 = scalar_lea.sflag [#allocation8], %s901_s28 }
  0x25   : > { %s213_s11 = sshll.u32 %s202_s7, 4  ;;  %s813_s6 = smov [#allocation7]   ;;  %s214_s11 = int_to_ptr.vmem [resolvable:$true] %s213_s11 }
  0x26   : > { %s711_s19 = scalar_lea.vmem %s214_s11, 256  ;;  %s716_s8 = sshll.u32 %s813_s6, 4  ;;  %s717_s8 = int_to_ptr.vmem [resolvable:$false] %s716_s8 }
  0x27   : > { %p712_p12 = scmp.ne.s32.totalorder %s214_s11, %s711_s19  ;;  %s718_s10 = scalar_lea.vmem %s717_s8, 512 }
  0x28   : > { %p719_p1 = scmp.lt.s32.totalorder %s214_s11, %s717_s8  ;;  %p720_p2 = scmp.lt.s32.totalorder %s718_s10, %s711_s19 }
  0x29   : > { %p714_p6 = pnand %p712_p12, %p672_p3 }
  0x2a   : > { %p721_p4 = por %p720_p2, %p719_p1 }
  0x2b   : > { %p715_p7 = pneg %p714_p6 }
  0x2d   : > { %p722_p10 = pnand %p721_p4, %p715_p7 }
  0x2f   : > { %725 = shalt.err (!%p722_p10)
}
  0x30   : > { %614 = dma.hbm_to_vmem [thread:$0]  (!%p910_p0), %s211_s5, 256, %s214_s11, %s199_s18  }
  0x31   : > { %222 = sbr.rel (%p928_p5) target bundleno = 284 (0x11c), region = 28  ;;  %s944_s28 = sand.u32 (!%p928_p5), 1, %s794_s13  }
  0x32   : > { %s591_s29 = sshll.u32 (!%p928_p5), %s944_s28, 4  ;;  %s225_s30 = scalar_lea.sflag (!%p928_p5), [#allocation5], %s944_s28 }
  0x33   : > { %s228_s21 = scalar_lea.vmem (!%p928_p5), [#allocation4], %s591_s29 }
  0x36   : > { %777 = dma.done.wait (%p883_p8), %s225_s30, 256  }
  0x37   : > { %779 = vsyncadd (%p883_p8), %s225_s30, 4294967040  ;;  %s234_s9 = scalar_lea.sflag [#allocation8], %s944_s28  ;;  %s237_s23 = scalar_lea.vmem [#allocation7], %s591_s29 }
  0x38   : > { %781 = dma.done.wait (%p883_p8), %s234_s9, 256  }
  0x39   : > { %783 = vsyncadd (%p883_p8), %s234_s9, 4294967040  ;;  %v292_v0 = vld [vmem:[%s228_s21 + $0x8] sm:$0xff]  ;;  %v291_v2 = vld [vmem:[%s228_s21] sm:$0xff]  ;;  %vm289_vm0 = vcmask 64512   ;;  %v814_v19 = vmov 0.0   ;;  %s593_s24 = sshll.u32 %s944_s28, 3 }
  0x3a   : > { %v294_v1 = vld [vmem:[%s237_s23 + $0x8] sm:$0xff]  ;;  %v293_v4 = vld [vmem:[%s237_s23] sm:$0xff]  ;;  %290 = vst.msk [vmem:[#allocation3] sm:$0xff] %vm289_vm0, %v814_v19  ;;  %s595_s22 = sshll.u32 %s802_s15, 7  ;;  %s271_s4 = scalar_lea.vmem [#allocation9], %s593_s24 }
  0x3b   : > { %v298_v3 = vadd.f32 %v294_v1, %v292_v0  ;;  %v296_v5 = vsub.f32 %v292_v0, %v294_v1  ;;  %v295_v6 = vsub.f32 %v291_v2, %v293_v4  ;;  %v297_v7 = vadd.f32 %v293_v4, %v291_v2  ;;  %s435_s5 = sshll.u32 %s271_s4, 4  ;;  %p278_p8 = scmp.lt.s32.totalorder %s802_s15, 1  ;;  %s967_s5 = int_to_ptr.vmem [resolvable:$true] %s435_s5 }
  0x3c   : > { %s965_s18 = scalar_lea.hbm %s1024_s3, %s595_s22  ;;  %s417_s19 = scalar_lea.sflag [#allocation6], %s944_s28 }
  0x3d   : > { %346 = vmatprep.subr.mxu0 %v298_v3  ;;  %v300_v8 = vand.u32 2147483647, %v296_v5  ;;  %380 = vmatprep.mubr.f32.mxu0 %v296_v5  ;;  %v299_v9 = vand.u32 2147483647, %v295_v6  ;;  %s1040_s15 = smov (!%p278_p8, %s802_s15), 1  ;;  %s726_s6 = scalar_lea.vmem %s967_s5, 128 }
  0x3e   : > { %347 = vmatpush1.xpose.msra.mxu0 %v297_v7  ;;  %p727_p0 = scmp.ne.s32.totalorder %s967_s5, %s726_s6  ;;  %s815_s8 = smov [#allocation9]  }
  0x3f   : > { %v302_v10 = vmin.f32 %v300_v8, 1.0  ;;  %v301_v11 = vmin.f32 %v299_v9, 1.0  ;;  %s730_s10 = sshll.u32 %s815_s8, 4  ;;  %s731_s10 = int_to_ptr.vmem [resolvable:$false] %s730_s10 }
  0x40   : > { %p728_p3 = pnand %p727_p0, %p887_p9  ;;  %s732_s29 = scalar_lea.vmem %s731_s10, 256 }
  0x41   : > { %381 = vmatmul.mubr.f32.vlgmr.msra.gmra.mxu0 %v295_v6  ;;  %v304_v12 = vmul.f32 0.5, %v302_v10  ;;  %v303_v13 = vmul.f32 0.5, %v301_v11  ;;  %v315_v27 = vld [vmem:[#allocation3] sm:$0xff]  ;;  %p733_p5 = scmp.lt.s32.totalorder %s967_s5, %s731_s10  ;;  %p734_p12 = scmp.lt.s32.totalorder %s732_s29, %s726_s6 }
  0x42   : > { %p729_p13 = pneg %p728_p3 }
  0x43   : > { %v306_v14 = vsub.f32 %v300_v8, %v304_v12  ;;  %v305_v15 = vsub.f32 %v299_v9, %v303_v13  ;;  %p735_p6 = por %p734_p12, %p733_p5 }
  0x45   : > { %v308_v16 = vmul.f32 %v306_v14, %v302_v10  ;;  %v307_v17 = vmul.f32 %v305_v15, %v301_v11  ;;  %p736_p7 = pnand %p735_p6, %p729_p13 }
  0x47   : > { %v394_v18 = vadd.f32 %v308_v16, %v307_v17 }
  0x49   : > { %395 = vadd.xlane.f32.xlu0 %v394_v18 }
  0xd2   : > { %v396_v20 = vpop.xlane.xlu0 %395 }
  0xd3   : > { %v397_v21 = vrot.slane %v396_v20, 4 }
  0xd5   : > { %v398_v22 = vadd.f32 %v397_v21, %v396_v20 }
  0xd7   : > { %v399_v23 = vrot.slane %v398_v22, 2 }
  0xd9   : > { %v400_v24 = vadd.f32 %v399_v23, %v398_v22 }
  0xdb   : > { %v401_v25 = vrot.slane %v400_v24, 1 }
  0xdd   : > { %v402_v26 = vadd.f32 %v401_v25, %v400_v24 }
  0xdf   : > { %600 = vpush %v402_v26 }
 0x101   : > { %v382_v28 = vpop.f32.mrf.mxu0 }
 0x102   : > { %v386_v29 = vadd.f32 %v382_v28, %v315_v27 }
 0x103   : > { %v384_v30 = vpop.f32.mrf.mxu0 }
 0x104   : > { %388 = vst.msk [vmem:[#allocation3] sm:$0xff] %vm289_vm0, %v386_v29 }
 0x10b   : > { %v407_v31 = vld [vmem:[#allocation3] sm:$0xff] }
 0x10c   : > { %408 = vst.msk [vmem:[%s271_s4] sm:$0xff] %vm289_vm0, %v407_v31 }
 0x10d   : > { %739 = shalt.err (!%p736_p7)
}
 0x10e   : > { %s740_s30 = scalar_lea.hbm %s965_s18, 128  ;;  %s744_s9 = scalar_lea.hbm %s1024_s3, 256 }
 0x10f   : > { %p741_p1 = scmp.ne.s32.totalorder %s965_s18, %s740_s30  ;;  %p745_p10 = scmp.lt.s32.totalorder %s965_s18, %s1024_s3 }
 0x110   : > { %p746_p8 = scmp.lt.s32.totalorder %s744_s9, %s740_s30 }
 0x111   : > { %p742_p2 = pnand %p741_p1, %p887_p9 }
 0x112   : > { %p747_p0 = por %p746_p8, %p745_p10 }
 0x113   : > { %p743_p4 = pneg %p742_p2 }
 0x115   : > { %p748_p3 = pnand %p747_p0, %p743_p4 }
 0x117   : > { %751 = shalt.err (!%p748_p3)
}
 0x118   : > { %606 = dma.vmem_to_hbm [thread:$0]  (%p887_p9), %s967_s5, 128, %s965_s18, %s417_s19   ;;  %vm405_vm1 = vcmask 0  }
 0x119   : > { %s282_s7 = scalar_lea.vmem %s1023_s2, %s1040_s15  ;;  %s601_s11 = spop %600 }
 0x11a   : > { %v404_v32 = vstv %s601_s11 }
 0x11b   : > { %406 = vst.msk [vmem:[%s282_s7] sm:$0x1] %vm405_vm1, %v404_v32 }
 0x11c PF: > { %s457_s6 = sand.u32 1, %s790_s12   ;;  %p1031_p13 = scmp.ge.s32.totalorder %s810_s17, 2 }
 0x11d   : > { %s458_s25 = scalar_lea.sflag [#allocation6], %s457_s6 }
 0x11e   : > { %p616_p5 = pnand %p1031_p13, %p894_p11 }
 0x120   : > { %p617_p12 = pneg %p616_p5 }
 0x122   : > { %785 = dma.done.wait (%p617_p12), %s458_s25, 128  }
 0x123   : > { %787 = vsyncadd (%p617_p12), %s458_s25, 4294967168  ;;  %s23_s17 = sadd.s32 1, %s810_s17   ;;  %s1032_s12 = smov %s794_s13 }
 0x124   : > { %p20_p9 = scmp.ge.s32.totalorder %s23_s17, 4   ;;  %s1033_s13 = smov %s798_s14 }
 0x125   : > { %s1034_s14 = smov %s892_s26  ;;  %s1035_s15 = smov %s806_s16 }
 0x126   : > { %s1036_s16 = smov %s1038_s20  ;;  %22 = sbr.rel (!%p20_p9) target bundleno = 8 (0x8), region = 106 }
 0x12b   :  { %463 = vsyncpa [#allocation5], 1 }
 0x12c   :  { %465 = vsyncpa [#allocation5 + $0x1], 1 }
 0x12d   :  { %466 = vsyncpa [#allocation8], 1 }
 0x12e   :  { %468 = vsyncpa [#allocation8 + $0x1], 1 }
 0x12f   :  { %469 = vsyncpa [#allocation6], 1 }
 0x130   :  { %471 = vsyncpa [#allocation6 + $0x1], 1 }

</bundles_post_ra>
